<compile_context>
chip_gen: v7x
topology: tpu7x:2x2x1
jax: 0.10.0
libtpu: 0.0.40
codegen_flags: <defaults>
</compile_context>

<pallas_src>
from functools import partial

import jax
import jax.numpy as jnp
from jax import lax
from jax.experimental import pallas as pl
from jax.experimental.pallas import tpu as pltpu


def _rup(a, m):
    return -(-a // m) * m


# ---------------------------------------------------------------------------
# Fused kernel: [conv3x3 + folded-BN shift + relu] x 2 on one image per step.
# The image is flattened (row stride img_w) on the lane axis, so each 3x3 tap
# is a contiguous lane slice and the whole conv is 9 accumulating MXU matmuls.
# ---------------------------------------------------------------------------
def _unet_conv2_fused_kernel(x_ref, w1_ref, s1_ref, w2_ref, s2_ref, o_ref,
                             h1_ref, *, img_w, l1, l2):
    c1p = w1_ref.shape[1]
    c2p = w2_ref.shape[1]

    # ---- stage 1: conv3x3 (bf16 x bf16 -> f32) + shift + relu -> bf16 scratch
    acc1 = jnp.zeros((c1p, l1), jnp.float32)
    t = 0
    for kh in range(3):
        for kw in range(3):
            off = kh * img_w + kw
            acc1 = acc1 + jnp.dot(w1_ref[t], x_ref[:, off:off + l1],
                                  preferred_element_type=jnp.float32)
            t += 1
    h1_ref[...] = jnp.maximum(acc1 + s1_ref[...], 0.0).astype(h1_ref.dtype)

    # ---- stage 2 on the VMEM-resident stage-1 activation ---------------------
    acc2 = jnp.zeros((c2p, l2), jnp.float32)
    t = 0
    for kh in range(3):
        for kw in range(3):
            off = kh * img_w + kw
            acc2 = acc2 + jnp.dot(w2_ref[t], h1_ref[:, off:off + l2],
                                  preferred_element_type=jnp.float32)
            t += 1
    o_ref[...] = jnp.maximum(acc2 + s2_ref[...], 0.0).astype(o_ref.dtype)


# ---------------------------------------------------------------------------
# VMEM budgeting (generation-aware)
# ---------------------------------------------------------------------------
def _vmem_bytes(cin_p, c1p, c2p, hwp, l1, l2):
    bf, f32 = 2, 4
    x_bufs = 2 * cin_p * hwp * bf                      # double-buffered image block
    w_bufs = 2 * 9 * (c1p * cin_p + c2p * c1p) * bf    # weight blocks (x2 buffers)
    s_bufs = 2 * 2 * 8 * 128 * f32                     # shift tiles padded to a vreg
    o_bufs = 2 * c2p * l2 * f32                        # double-buffered output block
    h1 = c1p * l1 * bf                                 # stage-1 scratch
    accs = (c1p * l1 + c2p * l2) * f32                 # f32 accumulators
    slices = 2 * max(cin_p * l1, c1p * l2) * bf        # relayout temps for tap slices
    return x_bufs + w_bufs + s_bufs + o_bufs + h1 + accs + slices + (1 << 20)


def _vmem_limit_bytes(need):
    try:
        cap = int(pltpu.get_tpu_info().vmem_capacity_bytes)
    except Exception:
        cap = 64 << 20          # conservative fallback: v7x physical VMEM per TC
    # Never below the common 32 MiB scoped default (explicitly overrides v5e's
    # 16 MiB default), never above ~3/4 of the physical capacity.
    return int(min(max(32 << 20, need * 2), cap * 3 // 4))


# ---------------------------------------------------------------------------
# Parameter folding / kernel layout
# ---------------------------------------------------------------------------
def fold_conv_bn(w_oihw, bias, bn, eps=1e-5):
    """Fold eval-mode BatchNorm into the conv (f32). Returns (w_oihw, shift)."""
    if bn is None:
        return w_oihw, bias
    gamma, beta, mean, var = bn
    scale = gamma / jnp.sqrt(var + eps)
    return w_oihw * scale[:, None, None, None], (bias - mean) * scale + beta


def _to_kernel_layout(w_oihw, shift, cin_p, cout_p):
    """(Cout, Cin, 3, 3) f32 -> (9, Cout_p, Cin_p) bf16 (tap-major), shift (Cout_p,1) f32."""
    cout, cin = w_oihw.shape[0], w_oihw.shape[1]
    wt = jnp.transpose(w_oihw, (2, 3, 0, 1)).reshape(9, cout, cin)
    wt = jnp.pad(wt, ((0, 0), (0, cout_p - cout), (0, cin_p - cin)))
    sk = jnp.pad(shift, (0, cout_p - cout)).reshape(cout_p, 1)
    return wt.astype(jnp.bfloat16), sk.astype(jnp.float32)


def init_raw_params(key, in_size, out_size, is_batchnorm=True):
    ks = jax.random.split(key, 12)

    def bn_params(i, c):
        gamma = 1.0 + 0.1 * jax.random.normal(ks[i], (c,), jnp.float32)
        beta = 0.1 * jax.random.normal(ks[i + 1], (c,), jnp.float32)
        mean = 0.1 * jax.random.normal(ks[i + 2], (c,), jnp.float32)
        var = jnp.abs(jax.random.normal(ks[i + 3], (c,), jnp.float32)) + 0.5
        return gamma, beta, mean, var

    return {
        "w1": 0.2 * jax.random.normal(ks[0], (out_size, in_size, 3, 3), jnp.float32),
        "b1": 0.05 * jax.random.normal(ks[1], (out_size,), jnp.float32),
        "w2": 0.2 * jax.random.normal(ks[2], (out_size, out_size, 3, 3), jnp.float32),
        "b2": 0.05 * jax.random.normal(ks[3], (out_size,), jnp.float32),
        "bn1": bn_params(4, out_size) if is_batchnorm else None,
        "bn2": bn_params(8, out_size) if is_batchnorm else None,
    }


def prepare_kernel_params(raw, in_size, out_size, eps=1e-5):
    w1f, s1f = fold_conv_bn(raw["w1"], raw["b1"], raw["bn1"], eps)
    w2f, s2f = fold_conv_bn(raw["w2"], raw["b2"], raw["bn2"], eps)
    cin_p, cout_p = _rup(in_size, 8), _rup(out_size, 8)
    w1k, s1k = _to_kernel_layout(w1f, s1f, cin_p, cout_p)
    w2k, s2k = _to_kernel_layout(w2f, s2f, cout_p, cout_p)
    return {"w1": w1k, "s1": s1k, "w2": w2k, "s2": s2k,
            "in_size": in_size, "out_size": out_size,
            "folded_f32": {"w1": w1f, "s1": s1f, "w2": w2f, "s2": s2f}}


# ---------------------------------------------------------------------------
# Module forward
# ---------------------------------------------------------------------------
def unet_conv2_forward(x_nchw, params):
    n, cin, h, w = x_nchw.shape
    assert h >= 5 and w >= 5, "two VALID 3x3 convs need spatial dims >= 5"
    cout = params["out_size"]
    cin_p = params["w1"].shape[2]
    c1p = params["w1"].shape[1]
    c2p = params["w2"].shape[1]

    ho2, wo2 = h - 4, w - 4
    # Lane extents (all multiples of 128):
    #  l2  : stage-2 columns computed/stored per image (row stride w, junk in the
    #        last 2 columns of each row + tail padding, sliced off in the wrapper)
    #  l1  : stage-1 scratch columns; must cover l2 plus the 3x3 halo (2*w + 2)
    #  hwp : padded flattened image lanes; must cover l1 plus the 3x3 halo
    l2 = _rup(ho2 * w, 128)
    l1 = _rup(2 * w + 2 + l2, 128)
    hwp = _rup(2 * w + 2 + l1, 128)

    # Raw image -> bf16, channel-pad to a sublane multiple, flatten + lane-pad.
    xk = x_nchw.astype(jnp.bfloat16)
    xk = jnp.pad(xk, ((0, 0), (0, cin_p - cin), (0, 0), (0, 0)))
    xk = jnp.pad(xk.reshape(n, cin_p, h * w), ((0, 0), (0, 0), (0, hwp - h * w)))

    vmem_need = _vmem_bytes(cin_p, c1p, c2p, hwp, l1, l2)
    vmem_limit = _vmem_limit_bytes(vmem_need)
    if vmem_need > vmem_limit:
        raise ValueError(
            f"per-image working set ~{vmem_need} B exceeds VMEM limit {vmem_limit} B; "
            "a row-tiled (halo) variant is required for this shape")

    kernel = partial(_unet_conv2_fused_kernel, img_w=w, l1=l1, l2=l2)
    out = pl.pallas_call(
        kernel,
        out_shape=jax.ShapeDtypeStruct((n, c2p, l2), jnp.float32),
        grid=(n,),
        in_specs=[
            pl.BlockSpec((None, cin_p, hwp), lambda i: (i, 0, 0)),   # raw image
            pl.BlockSpec((9, c1p, cin_p), lambda i: (0, 0, 0)),      # stage-1 taps
            pl.BlockSpec((c1p, 1), lambda i: (0, 0)),                # stage-1 shift
            pl.BlockSpec((9, c2p, c1p), lambda i: (0, 0, 0)),        # stage-2 taps
            pl.BlockSpec((c2p, 1), lambda i: (0, 0)),                # stage-2 shift
        ],
        out_specs=pl.BlockSpec((None, c2p, l2), lambda i: (i, 0, 0)),
        scratch_shapes=[pltpu.VMEM((c1p, l1), jnp.bfloat16)],        # stage-1 act
        compiler_params=pltpu.CompilerParams(
            dimension_semantics=("parallel",),
            vmem_limit_bytes=vmem_limit),
    )(xk, params["w1"], params["s1"], params["w2"], params["s2"])

    out = out[:, :cout, :ho2 * w].reshape(n, cout, ho2, w)
    return out[:, :, :, :wo2]


# ---------------------------------------------------------------------------
# References for validation
# ---------------------------------------------------------------------------
def _ref_forward_f32(x, raw, eps=1e-5):
    """Full-f32 reference matching the PyTorch module (conv + eval BN + relu, x2)."""
    def stage(x, w, b, bn):
        y = lax.conv_general_dilated(
            x, w, (1, 1), "VALID", dimension_numbers=("NCHW", "OIHW", "NCHW"),
            precision=lax.Precision.HIGHEST)
        y = y + b[None, :, None, None]
        if bn is not None:
            g, be, m, v = bn
            y = (y - m[None, :, None, None]) * (g / jnp.sqrt(v + eps))[None, :, None, None] \
                + be[None, :, None, None]
        return jnp.maximum(y, 0.0)

    y = stage(x, raw["w1"], raw["b1"], raw["bn1"])
    return stage(y, raw["w2"], raw["b2"], raw["bn2"])


def _ref_forward_kernel_math(x, kparams):
    """Emulates the kernel numerics (folded BN, bf16 operands, f32 accumulation,
    bf16 intermediate) with plain lax ops -> tight-tolerance check."""
    f = kparams["folded_f32"]

    def stage(x, wf, sf):
        wq = wf.astype(jnp.bfloat16).astype(jnp.float32)
        y = lax.conv_general_dilated(
            x, wq, (1, 1), "VALID", dimension_numbers=("NCHW", "OIHW", "NCHW"),
            precision=lax.Precision.HIGHEST)
        return jnp.maximum(y + sf[None, :, None, None], 0.0)

    xq = x.astype(jnp.bfloat16).astype(jnp.float32)
    h = stage(xq, f["w1"], f["s1"])
    h = h.astype(jnp.bfloat16).astype(jnp.float32)
    return stage(h, f["w2"], f["s2"])


if __name__ == "__main__":
    key = jax.random.PRNGKey(0)
    k_x, k_p = jax.random.split(key)

    n, in_size, out_size, h, w = 2, 4, 8, 16, 16
    x = jax.random.normal(k_x, (n, in_size, h, w), jnp.float32)   # NCHW, like PyTorch
    raw = init_raw_params(k_p, in_size, out_size, is_batchnorm=True)
    kparams = prepare_kernel_params(raw, in_size, out_size)

    fwd = jax.jit(lambda a: unet_conv2_forward(a, kparams))
    out = jax.block_until_ready(fwd(x))

    # two 3x3 VALID convs: 16 -> 14 -> 12
    assert out.shape == (n, out_size, h - 4, w - 4), out.shape
    assert bool(jnp.all(out >= 0.0))                               # ReLU output

    # Tight check against an exact emulation of the kernel's math (bf16 operands).
    emu = _ref_forward_kernel_math(x, kparams)
    emu_err = float(jnp.max(jnp.abs(out - emu)))
    assert bool(jnp.allclose(out, emu, atol=5e-3, rtol=5e-3)), emu_err

    # Loose check against the full-f32 module semantics (budget = bf16 operands).
    ref = _ref_forward_f32(x, raw)
    ref_err = float(jnp.max(jnp.abs(out - ref)))
    assert bool(jnp.allclose(out, ref, atol=1e-1, rtol=1e-1)), ref_err

    print("KERNEL_OK")
</pallas_src>

<mosaic_0001>
module attributes {stable_mosaic.version = 11 : i64} {
  func.func @_unet_conv2_fused_kernel(%arg0: i32, %arg1: memref<1x8x512xbf16, #tpu.memory_space<vmem>>, %arg2: memref<9x8x8xbf16, #tpu.memory_space<vmem>>, %arg3: memref<8x1xf32, #tpu.memory_space<vmem>>, %arg4: memref<9x8x8xbf16, #tpu.memory_space<vmem>>, %arg5: memref<8x1xf32, #tpu.memory_space<vmem>>, %arg6: memref<1x8x256xf32, #tpu.memory_space<vmem>>, %arg7: memref<8x384xbf16, #tpu.memory_space<vmem>>) attributes {dimension_semantics = [#tpu.dimension_semantics<parallel>], iteration_bounds = array<i64: 2>, scalar_prefetch = 0 : i64, scratch_operands = 1 : i64, tpu.core_type = #tpu.core_type<tc>, window_params = [{transform_indices = @transform_0, window_bounds = array<i64: 1, 8, 512>}, {pipeline_mode = #tpu.pipeline_mode<synchronous>, transform_indices = @transform_1, window_bounds = array<i64: 9, 8, 8>}, {pipeline_mode = #tpu.pipeline_mode<synchronous>, transform_indices = @transform_2, window_bounds = array<i64: 8, 1>}, {pipeline_mode = #tpu.pipeline_mode<synchronous>, transform_indices = @transform_3, window_bounds = array<i64: 9, 8, 8>}, {pipeline_mode = #tpu.pipeline_mode<synchronous>, transform_indices = @transform_4, window_bounds = array<i64: 8, 1>}, {transform_indices = @transform_5, window_bounds = array<i64: 1, 8, 256>}]} {
    %cst = arith.constant 0.000000e+00 : f32
    %0 = vector.broadcast %cst : f32 to vector<8x384xf32>
    %c0 = arith.constant 0 : index
    %c0_0 = arith.constant 0 : index
    %c0_1 = arith.constant 0 : index
    %1 = vector.load %arg2[%c0, %c0_0, %c0_1] : memref<9x8x8xbf16, #tpu.memory_space<vmem>>, vector<1x8x8xbf16>
    %2 = vector.shape_cast %1 : vector<1x8x8xbf16> to vector<8x8xbf16>
    %c0_2 = arith.constant 0 : index
    %c0_3 = arith.constant 0 : index
    %c0_4 = arith.constant 0 : index
    %3 = vector.load %arg1[%c0_2, %c0_3, %c0_4] : memref<1x8x512xbf16, #tpu.memory_space<vmem>>, vector<1x8x384xbf16>
    %4 = vector.shape_cast %3 : vector<1x8x384xbf16> to vector<8x384xbf16>
    %cst_5 = arith.constant dense<0.000000e+00> : vector<8x384xf32>
    %5 = tpu.matmul %2, %4, %cst_5 {dimension_numbers = #tpu.dot_dimension_numbers<[1], [0], [0], [1], [0, 0, 1, 1], [], []>} : vector<8x8xbf16>, vector<8x384xbf16>, vector<8x384xf32> -> vector<8x384xf32>
    %6 = arith.addf %0, %5 : vector<8x384xf32>
    %c1 = arith.constant 1 : index
    %c0_6 = arith.constant 0 : index
    %c0_7 = arith.constant 0 : index
    %7 = vector.load %arg2[%c1, %c0_6, %c0_7] : memref<9x8x8xbf16, #tpu.memory_space<vmem>>, vector<1x8x8xbf16>
    %8 = vector.shape_cast %7 : vector<1x8x8xbf16> to vector<8x8xbf16>
    %c0_8 = arith.constant 0 : index
    %c0_9 = arith.constant 0 : index
    %c1_10 = arith.constant 1 : index
    %9 = vector.load %arg1[%c0_8, %c0_9, %c1_10] : memref<1x8x512xbf16, #tpu.memory_space<vmem>>, vector<1x8x384xbf16>
    %10 = vector.shape_cast %9 : vector<1x8x384xbf16> to vector<8x384xbf16>
    %cst_11 = arith.constant dense<0.000000e+00> : vector<8x384xf32>
    %11 = tpu.matmul %8, %10, %cst_11 {dimension_numbers = #tpu.dot_dimension_numbers<[1], [0], [0], [1], [0, 0, 1, 1], [], []>} : vector<8x8xbf16>, vector<8x384xbf16>, vector<8x384xf32> -> vector<8x384xf32>
    %12 = arith.addf %6, %11 : vector<8x384xf32>
    %c2 = arith.constant 2 : index
    %c0_12 = arith.constant 0 : index
    %c0_13 = arith.constant 0 : index
    %13 = vector.load %arg2[%c2, %c0_12, %c0_13] : memref<9x8x8xbf16, #tpu.memory_space<vmem>>, vector<1x8x8xbf16>
    %14 = vector.shape_cast %13 : vector<1x8x8xbf16> to vector<8x8xbf16>
    %c0_14 = arith.constant 0 : index
    %c0_15 = arith.constant 0 : index
    %c2_16 = arith.constant 2 : index
    %15 = vector.load %arg1[%c0_14, %c0_15, %c2_16] : memref<1x8x512xbf16, #tpu.memory_space<vmem>>, vector<1x8x384xbf16>
    %16 = vector.shape_cast %15 : vector<1x8x384xbf16> to vector<8x384xbf16>
    %cst_17 = arith.constant dense<0.000000e+00> : vector<8x384xf32>
    %17 = tpu.matmul %14, %16, %cst_17 {dimension_numbers = #tpu.dot_dimension_numbers<[1], [0], [0], [1], [0, 0, 1, 1], [], []>} : vector<8x8xbf16>, vector<8x384xbf16>, vector<8x384xf32> -> vector<8x384xf32>
    %18 = arith.addf %12, %17 : vector<8x384xf32>
    %c3 = arith.constant 3 : index
    %c0_18 = arith.constant 0 : index
    %c0_19 = arith.constant 0 : index
    %19 = vector.load %arg2[%c3, %c0_18, %c0_19] : memref<9x8x8xbf16, #tpu.memory_space<vmem>>, vector<1x8x8xbf16>
    %20 = vector.shape_cast %19 : vector<1x8x8xbf16> to vector<8x8xbf16>
    %c0_20 = arith.constant 0 : index
    %c0_21 = arith.constant 0 : index
    %c16 = arith.constant 16 : index
    %21 = vector.load %arg1[%c0_20, %c0_21, %c16] : memref<1x8x512xbf16, #tpu.memory_space<vmem>>, vector<1x8x384xbf16>
    %22 = vector.shape_cast %21 : vector<1x8x384xbf16> to vector<8x384xbf16>
    %cst_22 = arith.constant dense<0.000000e+00> : vector<8x384xf32>
    %23 = tpu.matmul %20, %22, %cst_22 {dimension_numbers = #tpu.dot_dimension_numbers<[1], [0], [0], [1], [0, 0, 1, 1], [], []>} : vector<8x8xbf16>, vector<8x384xbf16>, vector<8x384xf32> -> vector<8x384xf32>
    %24 = arith.addf %18, %23 : vector<8x384xf32>
    %c4 = arith.constant 4 : index
    %c0_23 = arith.constant 0 : index
    %c0_24 = arith.constant 0 : index
    %25 = vector.load %arg2[%c4, %c0_23, %c0_24] : memref<9x8x8xbf16, #tpu.memory_space<vmem>>, vector<1x8x8xbf16>
    %26 = vector.shape_cast %25 : vector<1x8x8xbf16> to vector<8x8xbf16>
    %c0_25 = arith.constant 0 : index
    %c0_26 = arith.constant 0 : index
    %c17 = arith.constant 17 : index
    %27 = vector.load %arg1[%c0_25, %c0_26, %c17] : memref<1x8x512xbf16, #tpu.memory_space<vmem>>, vector<1x8x384xbf16>
    %28 = vector.shape_cast %27 : vector<1x8x384xbf16> to vector<8x384xbf16>
    %cst_27 = arith.constant dense<0.000000e+00> : vector<8x384xf32>
    %29 = tpu.matmul %26, %28, %cst_27 {dimension_numbers = #tpu.dot_dimension_numbers<[1], [0], [0], [1], [0, 0, 1, 1], [], []>} : vector<8x8xbf16>, vector<8x384xbf16>, vector<8x384xf32> -> vector<8x384xf32>
    %30 = arith.addf %24, %29 : vector<8x384xf32>
    %c5 = arith.constant 5 : index
    %c0_28 = arith.constant 0 : index
    %c0_29 = arith.constant 0 : index
    %31 = vector.load %arg2[%c5, %c0_28, %c0_29] : memref<9x8x8xbf16, #tpu.memory_space<vmem>>, vector<1x8x8xbf16>
    %32 = vector.shape_cast %31 : vector<1x8x8xbf16> to vector<8x8xbf16>
    %c0_30 = arith.constant 0 : index
    %c0_31 = arith.constant 0 : index
    %c18 = arith.constant 18 : index
    %33 = vector.load %arg1[%c0_30, %c0_31, %c18] : memref<1x8x512xbf16, #tpu.memory_space<vmem>>, vector<1x8x384xbf16>
    %34 = vector.shape_cast %33 : vector<1x8x384xbf16> to vector<8x384xbf16>
    %cst_32 = arith.constant dense<0.000000e+00> : vector<8x384xf32>
    %35 = tpu.matmul %32, %34, %cst_32 {dimension_numbers = #tpu.dot_dimension_numbers<[1], [0], [0], [1], [0, 0, 1, 1], [], []>} : vector<8x8xbf16>, vector<8x384xbf16>, vector<8x384xf32> -> vector<8x384xf32>
    %36 = arith.addf %30, %35 : vector<8x384xf32>
    %c6 = arith.constant 6 : index
    %c0_33 = arith.constant 0 : index
    %c0_34 = arith.constant 0 : index
    %37 = vector.load %arg2[%c6, %c0_33, %c0_34] : memref<9x8x8xbf16, #tpu.memory_space<vmem>>, vector<1x8x8xbf16>
    %38 = vector.shape_cast %37 : vector<1x8x8xbf16> to vector<8x8xbf16>
    %c0_35 = arith.constant 0 : index
    %c0_36 = arith.constant 0 : index
    %c32 = arith.constant 32 : index
    %39 = vector.load %arg1[%c0_35, %c0_36, %c32] : memref<1x8x512xbf16, #tpu.memory_space<vmem>>, vector<1x8x384xbf16>
    %40 = vector.shape_cast %39 : vector<1x8x384xbf16> to vector<8x384xbf16>
    %cst_37 = arith.constant dense<0.000000e+00> : vector<8x384xf32>
    %41 = tpu.matmul %38, %40, %cst_37 {dimension_numbers = #tpu.dot_dimension_numbers<[1], [0], [0], [1], [0, 0, 1, 1], [], []>} : vector<8x8xbf16>, vector<8x384xbf16>, vector<8x384xf32> -> vector<8x384xf32>
    %42 = arith.addf %36, %41 : vector<8x384xf32>
    %c7 = arith.constant 7 : index
    %c0_38 = arith.constant 0 : index
    %c0_39 = arith.constant 0 : index
    %43 = vector.load %arg2[%c7, %c0_38, %c0_39] : memref<9x8x8xbf16, #tpu.memory_space<vmem>>, vector<1x8x8xbf16>
    %44 = vector.shape_cast %43 : vector<1x8x8xbf16> to vector<8x8xbf16>
    %c0_40 = arith.constant 0 : index
    %c0_41 = arith.constant 0 : index
    %c33 = arith.constant 33 : index
    %45 = vector.load %arg1[%c0_40, %c0_41, %c33] : memref<1x8x512xbf16, #tpu.memory_space<vmem>>, vector<1x8x384xbf16>
    %46 = vector.shape_cast %45 : vector<1x8x384xbf16> to vector<8x384xbf16>
    %cst_42 = arith.constant dense<0.000000e+00> : vector<8x384xf32>
    %47 = tpu.matmul %44, %46, %cst_42 {dimension_numbers = #tpu.dot_dimension_numbers<[1], [0], [0], [1], [0, 0, 1, 1], [], []>} : vector<8x8xbf16>, vector<8x384xbf16>, vector<8x384xf32> -> vector<8x384xf32>
    %48 = arith.addf %42, %47 : vector<8x384xf32>
    %c8 = arith.constant 8 : index
    %c0_43 = arith.constant 0 : index
    %c0_44 = arith.constant 0 : index
    %49 = vector.load %arg2[%c8, %c0_43, %c0_44] : memref<9x8x8xbf16, #tpu.memory_space<vmem>>, vector<1x8x8xbf16>
    %50 = vector.shape_cast %49 : vector<1x8x8xbf16> to vector<8x8xbf16>
    %c0_45 = arith.constant 0 : index
    %c0_46 = arith.constant 0 : index
    %c34 = arith.constant 34 : index
    %51 = vector.load %arg1[%c0_45, %c0_46, %c34] : memref<1x8x512xbf16, #tpu.memory_space<vmem>>, vector<1x8x384xbf16>
    %52 = vector.shape_cast %51 : vector<1x8x384xbf16> to vector<8x384xbf16>
    %cst_47 = arith.constant dense<0.000000e+00> : vector<8x384xf32>
    %53 = tpu.matmul %50, %52, %cst_47 {dimension_numbers = #tpu.dot_dimension_numbers<[1], [0], [0], [1], [0, 0, 1, 1], [], []>} : vector<8x8xbf16>, vector<8x384xbf16>, vector<8x384xf32> -> vector<8x384xf32>
    %54 = arith.addf %48, %53 : vector<8x384xf32>
    %c0_48 = arith.constant 0 : index
    %c0_49 = arith.constant 0 : index
    %55 = vector.load %arg3[%c0_48, %c0_49] : memref<8x1xf32, #tpu.memory_space<vmem>>, vector<8x1xf32>
    %56 = vector.broadcast %55 : vector<8x1xf32> to vector<8x384xf32>
    %57 = arith.addf %54, %56 : vector<8x384xf32>
    %cst_50 = arith.constant 0.000000e+00 : f32
    %58 = vector.broadcast %cst_50 : f32 to vector<8x384xf32>
    %59 = arith.maximumf %57, %58 : vector<8x384xf32>
    %60 = arith.truncf %59 : vector<8x384xf32> to vector<8x384xbf16>
    %c0_51 = arith.constant 0 : index
    %c0_52 = arith.constant 0 : index
    %61 = vector.load %arg7[%c0_51, %c0_52] : memref<8x384xbf16, #tpu.memory_space<vmem>>, vector<8x384xbf16>
    tpu.vector_store %arg7[%c0_51, %c0_52], %60 {strides = array<i32>} : memref<8x384xbf16, #tpu.memory_space<vmem>>, vector<8x384xbf16>,
    %cst_53 = arith.constant 0.000000e+00 : f32
    %62 = vector.broadcast %cst_53 : f32 to vector<8x256xf32>
    %c0_54 = arith.constant 0 : index
    %c0_55 = arith.constant 0 : index
    %c0_56 = arith.constant 0 : index
    %63 = vector.load %arg4[%c0_54, %c0_55, %c0_56] : memref<9x8x8xbf16, #tpu.memory_space<vmem>>, vector<1x8x8xbf16>
    %64 = vector.shape_cast %63 : vector<1x8x8xbf16> to vector<8x8xbf16>
    %c0_57 = arith.constant 0 : index
    %c0_58 = arith.constant 0 : index
    %65 = vector.load %arg7[%c0_57, %c0_58] : memref<8x384xbf16, #tpu.memory_space<vmem>>, vector<8x256xbf16>
    %cst_59 = arith.constant dense<0.000000e+00> : vector<8x256xf32>
    %66 = tpu.matmul %64, %65, %cst_59 {dimension_numbers = #tpu.dot_dimension_numbers<[1], [0], [0], [1], [0, 0, 1, 1], [], []>} : vector<8x8xbf16>, vector<8x256xbf16>, vector<8x256xf32> -> vector<8x256xf32>
    %67 = arith.addf %62, %66 : vector<8x256xf32>
    %c1_60 = arith.constant 1 : index
    %c0_61 = arith.constant 0 : index
    %c0_62 = arith.constant 0 : index
    %68 = vector.load %arg4[%c1_60, %c0_61, %c0_62] : memref<9x8x8xbf16, #tpu.memory_space<vmem>>, vector<1x8x8xbf16>
    %69 = vector.shape_cast %68 : vector<1x8x8xbf16> to vector<8x8xbf16>
    %c0_63 = arith.constant 0 : index
    %c1_64 = arith.constant 1 : index
    %70 = vector.load %arg7[%c0_63, %c1_64] : memref<8x384xbf16, #tpu.memory_space<vmem>>, vector<8x256xbf16>
    %cst_65 = arith.constant dense<0.000000e+00> : vector<8x256xf32>
    %71 = tpu.matmul %69, %70, %cst_65 {dimension_numbers = #tpu.dot_dimension_numbers<[1], [0], [0], [1], [0, 0, 1, 1], [], []>} : vector<8x8xbf16>, vector<8x256xbf16>, vector<8x256xf32> -> vector<8x256xf32>
    %72 = arith.addf %67, %71 : vector<8x256xf32>
    %c2_66 = arith.constant 2 : index
    %c0_67 = arith.constant 0 : index
    %c0_68 = arith.constant 0 : index
    %73 = vector.load %arg4[%c2_66, %c0_67, %c0_68] : memref<9x8x8xbf16, #tpu.memory_space<vmem>>, vector<1x8x8xbf16>
    %74 = vector.shape_cast %73 : vector<1x8x8xbf16> to vector<8x8xbf16>
    %c0_69 = arith.constant 0 : index
    %c2_70 = arith.constant 2 : index
    %75 = vector.load %arg7[%c0_69, %c2_70] : memref<8x384xbf16, #tpu.memory_space<vmem>>, vector<8x256xbf16>
    %cst_71 = arith.constant dense<0.000000e+00> : vector<8x256xf32>
    %76 = tpu.matmul %74, %75, %cst_71 {dimension_numbers = #tpu.dot_dimension_numbers<[1], [0], [0], [1], [0, 0, 1, 1], [], []>} : vector<8x8xbf16>, vector<8x256xbf16>, vector<8x256xf32> -> vector<8x256xf32>
    %77 = arith.addf %72, %76 : vector<8x256xf32>
    %c3_72 = arith.constant 3 : index
    %c0_73 = arith.constant 0 : index
    %c0_74 = arith.constant 0 : index
    %78 = vector.load %arg4[%c3_72, %c0_73, %c0_74] : memref<9x8x8xbf16, #tpu.memory_space<vmem>>, vector<1x8x8xbf16>
    %79 = vector.shape_cast %78 : vector<1x8x8xbf16> to vector<8x8xbf16>
    %c0_75 = arith.constant 0 : index
    %c16_76 = arith.constant 16 : index
    %80 = vector.load %arg7[%c0_75, %c16_76] : memref<8x384xbf16, #tpu.memory_space<vmem>>, vector<8x256xbf16>
    %cst_77 = arith.constant dense<0.000000e+00> : vector<8x256xf32>
    %81 = tpu.matmul %79, %80, %cst_77 {dimension_numbers = #tpu.dot_dimension_numbers<[1], [0], [0], [1], [0, 0, 1, 1], [], []>} : vector<8x8xbf16>, vector<8x256xbf16>, vector<8x256xf32> -> vector<8x256xf32>
    %82 = arith.addf %77, %81 : vector<8x256xf32>
    %c4_78 = arith.constant 4 : index
    %c0_79 = arith.constant 0 : index
    %c0_80 = arith.constant 0 : index
    %83 = vector.load %arg4[%c4_78, %c0_79, %c0_80] : memref<9x8x8xbf16, #tpu.memory_space<vmem>>, vector<1x8x8xbf16>
    %84 = vector.shape_cast %83 : vector<1x8x8xbf16> to vector<8x8xbf16>
    %c0_81 = arith.constant 0 : index
    %c17_82 = arith.constant 17 : index
    %85 = vector.load %arg7[%c0_81, %c17_82] : memref<8x384xbf16, #tpu.memory_space<vmem>>, vector<8x256xbf16>
    %cst_83 = arith.constant dense<0.000000e+00> : vector<8x256xf32>
    %86 = tpu.matmul %84, %85, %cst_83 {dimension_numbers = #tpu.dot_dimension_numbers<[1], [0], [0], [1], [0, 0, 1, 1], [], []>} : vector<8x8xbf16>, vector<8x256xbf16>, vector<8x256xf32> -> vector<8x256xf32>
    %87 = arith.addf %82, %86 : vector<8x256xf32>
    %c5_84 = arith.constant 5 : index
    %c0_85 = arith.constant 0 : index
    %c0_86 = arith.constant 0 : index
    %88 = vector.load %arg4[%c5_84, %c0_85, %c0_86] : memref<9x8x8xbf16, #tpu.memory_space<vmem>>, vector<1x8x8xbf16>
    %89 = vector.shape_cast %88 : vector<1x8x8xbf16> to vector<8x8xbf16>
    %c0_87 = arith.constant 0 : index
    %c18_88 = arith.constant 18 : index
    %90 = vector.load %arg7[%c0_87, %c18_88] : memref<8x384xbf16, #tpu.memory_space<vmem>>, vector<8x256xbf16>
    %cst_89 = arith.constant dense<0.000000e+00> : vector<8x256xf32>
    %91 = tpu.matmul %89, %90, %cst_89 {dimension_numbers = #tpu.dot_dimension_numbers<[1], [0], [0], [1], [0, 0, 1, 1], [], []>} : vector<8x8xbf16>, vector<8x256xbf16>, vector<8x256xf32> -> vector<8x256xf32>
    %92 = arith.addf %87, %91 : vector<8x256xf32>
    %c6_90 = arith.constant 6 : index
    %c0_91 = arith.constant 0 : index
    %c0_92 = arith.constant 0 : index
    %93 = vector.load %arg4[%c6_90, %c0_91, %c0_92] : memref<9x8x8xbf16, #tpu.memory_space<vmem>>, vector<1x8x8xbf16>
    %94 = vector.shape_cast %93 : vector<1x8x8xbf16> to vector<8x8xbf16>
    %c0_93 = arith.constant 0 : index
    %c32_94 = arith.constant 32 : index
    %95 = vector.load %arg7[%c0_93, %c32_94] : memref<8x384xbf16, #tpu.memory_space<vmem>>, vector<8x256xbf16>
    %cst_95 = arith.constant dense<0.000000e+00> : vector<8x256xf32>
    %96 = tpu.matmul %94, %95, %cst_95 {dimension_numbers = #tpu.dot_dimension_numbers<[1], [0], [0], [1], [0, 0, 1, 1], [], []>} : vector<8x8xbf16>, vector<8x256xbf16>, vector<8x256xf32> -> vector<8x256xf32>
    %97 = arith.addf %92, %96 : vector<8x256xf32>
    %c7_96 = arith.constant 7 : index
    %c0_97 = arith.constant 0 : index
    %c0_98 = arith.constant 0 : index
    %98 = vector.load %arg4[%c7_96, %c0_97, %c0_98] : memref<9x8x8xbf16, #tpu.memory_space<vmem>>, vector<1x8x8xbf16>
    %99 = vector.shape_cast %98 : vector<1x8x8xbf16> to vector<8x8xbf16>
    %c0_99 = arith.constant 0 : index
    %c33_100 = arith.constant 33 : index
    %100 = vector.load %arg7[%c0_99, %c33_100] : memref<8x384xbf16, #tpu.memory_space<vmem>>, vector<8x256xbf16>
    %cst_101 = arith.constant dense<0.000000e+00> : vector<8x256xf32>
    %101 = tpu.matmul %99, %100, %cst_101 {dimension_numbers = #tpu.dot_dimension_numbers<[1], [0], [0], [1], [0, 0, 1, 1], [], []>} : vector<8x8xbf16>, vector<8x256xbf16>, vector<8x256xf32> -> vector<8x256xf32>
    %102 = arith.addf %97, %101 : vector<8x256xf32>
    %c8_102 = arith.constant 8 : index
    %c0_103 = arith.constant 0 : index
    %c0_104 = arith.constant 0 : index
    %103 = vector.load %arg4[%c8_102, %c0_103, %c0_104] : memref<9x8x8xbf16, #tpu.memory_space<vmem>>, vector<1x8x8xbf16>
    %104 = vector.shape_cast %103 : vector<1x8x8xbf16> to vector<8x8xbf16>
    %c0_105 = arith.constant 0 : index
    %c34_106 = arith.constant 34 : index
    %105 = vector.load %arg7[%c0_105, %c34_106] : memref<8x384xbf16, #tpu.memory_space<vmem>>, vector<8x256xbf16>
    %cst_107 = arith.constant dense<0.000000e+00> : vector<8x256xf32>
    %106 = tpu.matmul %104, %105, %cst_107 {dimension_numbers = #tpu.dot_dimension_numbers<[1], [0], [0], [1], [0, 0, 1, 1], [], []>} : vector<8x8xbf16>, vector<8x256xbf16>, vector<8x256xf32> -> vector<8x256xf32>
    %107 = arith.addf %102, %106 : vector<8x256xf32>
    %c0_108 = arith.constant 0 : index
    %c0_109 = arith.constant 0 : index
    %108 = vector.load %arg5[%c0_108, %c0_109] : memref<8x1xf32, #tpu.memory_space<vmem>>, vector<8x1xf32>
    %109 = vector.broadcast %108 : vector<8x1xf32> to vector<8x256xf32>
    %110 = arith.addf %107, %109 : vector<8x256xf32>
    %cst_110 = arith.constant 0.000000e+00 : f32
    %111 = vector.broadcast %cst_110 : f32 to vector<8x256xf32>
    %112 = arith.maximumf %110, %111 : vector<8x256xf32>
    %c0_111 = arith.constant 0 : index
    %c0_112 = arith.constant 0 : index
    %c0_113 = arith.constant 0 : index
    %113 = vector.load %arg6[%c0_111, %c0_112, %c0_113] : memref<1x8x256xf32, #tpu.memory_space<vmem>>, vector<1x8x256xf32>
    %114 = vector.shape_cast %113 : vector<1x8x256xf32> to vector<8x256xf32>
    %115 = vector.shape_cast %112 : vector<8x256xf32> to vector<1x8x256xf32>
    tpu.vector_store %arg6[%c0_111, %c0_112, %c0_113], %115 {strides = array<i32>} : memref<1x8x256xf32, #tpu.memory_space<vmem>>, vector<1x8x256xf32>,
    return
  }
  func.func @transform_0(%arg0: i32) -> (i32, i32, i32) {
    %c0_i32 = arith.constant 0 : i32
    %c0_i32_0 = arith.constant 0 : i32
    %c0_i32_1 = arith.constant 0 : i32
    return %arg0, %c0_i32, %c0_i32_0 : i32, i32, i32
  }
  func.func @transform_1(%arg0: i32) -> (i32, i32, i32) {
    %c0_i32 = arith.constant 0 : i32
    %c0_i32_0 = arith.constant 0 : i32
    %c0_i32_1 = arith.constant 0 : i32
    %c0_i32_2 = arith.constant 0 : i32
    return %c0_i32, %c0_i32_0, %c0_i32_1 : i32, i32, i32
  }
  func.func @transform_2(%arg0: i32) -> (i32, i32) {
    %c0_i32 = arith.constant 0 : i32
    %c0_i32_0 = arith.constant 0 : i32
    %c0_i32_1 = arith.constant 0 : i32
    return %c0_i32, %c0_i32_0 : i32, i32
  }
  func.func @transform_3(%arg0: i32) -> (i32, i32, i32) {
    %c0_i32 = arith.constant 0 : i32
    %c0_i32_0 = arith.constant 0 : i32
    %c0_i32_1 = arith.constant 0 : i32
    %c0_i32_2 = arith.constant 0 : i32
    return %c0_i32, %c0_i32_0, %c0_i32_1 : i32, i32, i32
  }
  func.func @transform_4(%arg0: i32) -> (i32, i32) {
    %c0_i32 = arith.constant 0 : i32
    %c0_i32_0 = arith.constant 0 : i32
    %c0_i32_1 = arith.constant 0 : i32
    return %c0_i32, %c0_i32_0 : i32, i32
  }
  func.func @transform_5(%arg0: i32) -> (i32, i32, i32) {
    %c0_i32 = arith.constant 0 : i32
    %c0_i32_0 = arith.constant 0 : i32
    %c0_i32_1 = arith.constant 0 : i32
    return %arg0, %c0_i32, %c0_i32_0 : i32, i32, i32
  }
}

</mosaic_0001>

<bundles_post_ra>
// kernel: _lambda_.1
= control target key start
LH: loop header
LB: loop body
LE: loop exit
PB: predicated region body
PF: predicated region fallthrough
CT: control target
= control target key end

     0   :  { %s2115_s18 = smov 0   ;;  %s2429_s0 = inlined_call_operand.vmem [shape: bf16[2,8,512], index: 0, kind: input, shape index: {}]   ;;  %s2430_s1 = inlined_call_operand.vmem [shape: bf16[9,8,8], index: 1, kind: input, shape index: {}]   ;;  %s2431_s2 = inlined_call_operand.vmem [shape: f32[8,1], index: 2, kind: input, shape index: {}]   ;;  %s2432_s3 = inlined_call_operand.vmem [shape: bf16[9,8,8], index: 3, kind: input, shape index: {}]   ;;  %s2433_s4 = inlined_call_operand.vmem [shape: f32[8,1], index: 4, kind: input, shape index: {}]   ;;  %s2434_s5 = inlined_call_operand.vmem [shape: f32[2,8,256], index: 5, kind: output, shape index: {}]  }
   0x1 LB: > { %s1876_s19 = sadd.s32 4294967295, %s2072_s18   ;;  %p1880_p0 = scmp.ge.s32.totalorder %s2072_s18, 1  ;;  %s2072_s18 = sphi %s2115_s18, %s15_s18  }
   0x2   : > { %p187_p1 = scmp.lt.s32.totalorder %s2072_s18, 3 }
   0x4   : > { %p188_p2 = pnand %p1880_p0, %p187_p1 }
   0x5   : > { %p215_p3 = scmp.lt.s32.totalorder (!%p188_p2), %s1876_s19, 1  ;;  %v2074_v0 = vmov (!%p188_p2), 0.0   ;;  %v2075_v1 = vmov (!%p188_p2), 0   ;;  %vm2076_vm0 = vmmov (!%p188_p2), 0   ;;  %s2077_s24 = smov (!%p188_p2), 127   ;;  %v1221_v8 = vld [vmem:[%s2431_s2] sm:$0xff] (!%p188_p2) }
   0x6   : > { %191 = sbr.rel (%p188_p2) target bundleno = 823 (0x337), region = 40  ;;  %1984 = vmatprep.subr.bf16.mxu1 (!%p188_p2), %v2074_v0  ;;  %301 = vmatprep.mubr.bf16.mxu0 (!%p188_p2), %v2075_v1  ;;  %s2078_s25 = smov (!%p188_p2), 126   ;;  %vm251_vm1 = vcmask (!%p188_p2), 1039360   ;;  %vm259_vm2 = vcmask (!%p188_p2), 1043456   ;;  %v1885_v19 = vld [vmem:[%s2430_s1 + $0x4] sm:$0xf] (!%p188_p2) }
   0x7   : > { %1986 = vmatprep.mubr.msk.bf16.mxu1 (!%p188_p2), %vm2076_vm0, %v2074_v0  ;;  %2057 = vset.pattern.permute.xlu0 (!%p188_p2), %v2075_v1  ;;  %s2079_s26 = smov (!%p188_p2), 112   ;;  %s2080_s27 = smov (!%p188_p2), 111   ;;  %vm255_vm3 = vcmask (!%p188_p2), 64512   ;;  %vm461_vm4 = vcmask (!%p188_p2), 1031168   ;;  %v226_v29 = vld [vmem:[%s2430_s1] sm:$0xf] (!%p188_p2) }
   0x8   : > { %s2081_s28 = smov (!%p188_p2), 110   ;;  %s2082_s29 = smov (!%p188_p2), 96   ;;  %vm571_vm5 = vcmask (!%p188_p2), 916480   ;;  %v1899_v39 = vld [vmem:[%s2430_s1 + $0x8] sm:$0xf] (!%p188_p2)  ;;  %vm681_vm6 = vcmask (!%p188_p2), 908288  }
   0x9   : > { %s2083_s30 = smov (!%p188_p2), 95   ;;  %s2084_s6 = smov (!%p188_p2), 94   ;;  %v1903_v49 = vld [vmem:[%s2430_s1 + $0xc] sm:$0xf] (!%p188_p2)  ;;  %vm791_vm7 = vcmask (!%p188_p2), 900096   ;;  %vm901_vm8 = vcmask (!%p188_p2), 785408  }
   0xa   : > { %v1907_v59 = vld [vmem:[%s2430_s1 + $0x10] sm:$0xf] (!%p188_p2)  ;;  %vm1011_vm9 = vcmask (!%p188_p2), 777216   ;;  %vm1121_vm10 = vcmask (!%p188_p2), 769024  }
   0xd   : > { %s2436_s19 = smov (!%p215_p3, %s1876_s19), 1 }
   0xe   : > { %s1962_s20 = sshll.u32 %s2436_s19, 4 }
   0xf   : > { %s2136_s23 = scalar_lea.vmem %s2429_s0, %s1962_s20  ;;  %s224_s13 = scalar_lea.vmem %s2434_s5, %s1962_s20 }
  0x10   : > { %v232_v2 = vld [vmem:[%s2136_s23 + $0x8] sm:$0xff]  ;;  %v231_v3 = vld [vmem:[%s2136_s23] sm:$0xff] }
  0x11   : > { %v1888_v4 = vcombine.low %v232_v2, %v232_v2  ;;  %v2140_v5 = vcombine.low %v231_v3, %v231_v3  ;;  %v1889_v6 = vcombine.high %v232_v2, %v232_v2  ;;  %v1887_v7 = vcombine.high %v231_v3, %v231_v3  ;;  %v2062_v13 = vld [vmem:[%s2136_s23 + $0x8] ss:$0 sps:$4 sm:$0xff]  }
  0x12   : > { %v368_v22 = vsel %vm259_vm2, %v2062_v13, 0 }
  0x13   : > { %247 = vrot.lane.b32.xlu1 %v1888_v4, %s2077_s24  ;;  %243 = vrot.lane.b32.xlu0 %v2140_v5, %s2077_s24  ;;  %v362_v21 = vsel %vm259_vm2, %v2140_v5, 0 }
  0x17   : > { %249 = vrot.lane.b32.xlu1 %v1889_v6, %s2077_s24  ;;  %245 = vrot.lane.b32.xlu0 %v1887_v7, %s2077_s24 }
  0x1b   : > { %453 = vrot.lane.b32.xlu0 %v2140_v5, %s2078_s25  ;;  %455 = vrot.lane.b32.xlu1 %v1887_v7, %s2078_s25 }
  0x1f   : > { %457 = vrot.lane.b32.xlu0 %v1888_v4, %s2078_s25  ;;  %459 = vrot.lane.b32.xlu1 %v1889_v6, %s2078_s25 }
  0x23   : > { %563 = vrot.lane.b32.xlu0 %v2140_v5, %s2079_s26  ;;  %565 = vrot.lane.b32.xlu1 %v1887_v7, %s2079_s26 }
  0x27   : > { %567 = vrot.lane.b32.xlu0 %v1888_v4, %s2079_s26  ;;  %569 = vrot.lane.b32.xlu1 %v1889_v6, %s2079_s26 }
  0x2b   : > { %673 = vrot.lane.b32.xlu0 %v2140_v5, %s2080_s27  ;;  %675 = vrot.lane.b32.xlu1 %v1887_v7, %s2080_s27 }
  0x2f   : > { %677 = vrot.lane.b32.xlu0 %v1888_v4, %s2080_s27  ;;  %679 = vrot.lane.b32.xlu1 %v1889_v6, %s2080_s27 }
  0x33   : > { %783 = vrot.lane.b32.xlu0 %v2140_v5, %s2081_s28  ;;  %785 = vrot.lane.b32.xlu1 %v1887_v7, %s2081_s28 }
  0x37   : > { %787 = vrot.lane.b32.xlu0 %v1888_v4, %s2081_s28  ;;  %789 = vrot.lane.b32.xlu1 %v1889_v6, %s2081_s28 }
  0x3b   : > { %893 = vrot.lane.b32.xlu0 %v2140_v5, %s2082_s29  ;;  %895 = vrot.lane.b32.xlu1 %v1887_v7, %s2082_s29 }
  0x3f   : > { %897 = vrot.lane.b32.xlu0 %v1888_v4, %s2082_s29  ;;  %899 = vrot.lane.b32.xlu1 %v1889_v6, %s2082_s29 }
  0x43   : > { %1003 = vrot.lane.b32.xlu0 %v2140_v5, %s2083_s30  ;;  %1005 = vrot.lane.b32.xlu1 %v1887_v7, %s2083_s30 }
  0x47   : > { %1007 = vrot.lane.b32.xlu0 %v1888_v4, %s2083_s30  ;;  %1009 = vrot.lane.b32.xlu1 %v1889_v6, %s2083_s30 }
  0x4b   : > { %1113 = vrot.lane.b32.xlu0 %v2140_v5, %s2084_s6  ;;  %1115 = vrot.lane.b32.xlu1 %v1887_v7, %s2084_s6 }
  0x4f   : > { %1117 = vrot.lane.b32.xlu0 %v1888_v4, %s2084_s6  ;;  %1119 = vrot.lane.b32.xlu1 %v1889_v6, %s2084_s6 }
  0x53   : > { %1224 = vperm.xlu0 %2057, %v1221_v8  }
  0x85   : > { %v248_v9 = vpop.permute.xlu1 %247  ;;  %v244_v10 = vpop.permute.xlu0 %243 }
  0x89   : > { %v250_v11 = vpop.permute.xlu1 %249  ;;  %v246_v12 = vpop.permute.xlu0 %245 }
  0x8a   : > { %v253_v14 = vsel %vm251_vm1, %v246_v12, %v248_v9  ;;  %v252_v15 = vsel %vm251_vm1, %v244_v10, %v246_v12  ;;  %v254_v16 = vsel %vm251_vm1, %v248_v9, %v250_v11 }
  0x8b   : > { %1890 = vmatprep.subr.msk.bf16.mxu0 %vm259_vm2, %v253_v14  ;;  %v261_v17 = vsel %vm259_vm2, %v252_v15, 0  ;;  %v267_v18 = vsel %vm259_vm2, %v254_v16, 0 }
  0x8c   : > { %270 = vmatpush1.bf16.msra.mxu0 %v261_v17  ;;  %1985 = vmatpush3.bf16.msra.mxu1 %v267_v18  ;;  %v1915_v17 = vld [vmem:[%s2430_s1 + $0x18] sm:$0xf] }
  0x8d   : > { %v454_v20 = vpop.permute.xlu0 %453  ;;  %1896 = vmatprep.subr.msk.bf16.mxu0 %vm259_vm2, %v1887_v7  ;;  %1990 = vmatprep.subr.bf16.mxu1 %v2074_v0  ;;  %v456_v23 = vpop.permute.xlu1 %455  ;;  %v1911_v7 = vld [vmem:[%s2430_s1 + $0x14] sm:$0xf] }
  0x8e   : > { %v462_v26 = vsel %vm461_vm4, %v454_v20, %v456_v23 }
  0x8f   : > { %1891 = vmatmul.mubr.msk.bf16.vlgmr.msra.gmra.mrb[0].mxu0 %vm255_vm3, %v1885_v19  ;;  %1987 = vmatmul.mubr.msk.bf16.vlgmr.msra.gmra.mrb[0].mxu1 %vm255_vm3, %v1885_v19  ;;  %v469_v30 = vsel %vm259_vm2, %v462_v26, 0 }
  0x90   : > { %371 = vmatpush1.bf16.msra.mxu0 %v362_v21  ;;  %1991 = vmatpush3.bf16.msra.mxu1 %v368_v22 }
  0x91   : > { %v458_v24 = vpop.permute.xlu0 %457  ;;  %402 = vmatprep.mubr.bf16.mxu0 %v2075_v1  ;;  %1992 = vmatprep.mubr.msk.bf16.mxu1 %vm2076_vm0, %v2074_v0  ;;  %v460_v25 = vpop.permute.xlu1 %459 }
  0x92   : > { %v463_v27 = vsel %vm461_vm4, %v456_v23, %v458_v24  ;;  %v464_v28 = vsel %vm461_vm4, %v458_v24, %v460_v25  ;;  %1996 = vmatprep.subr.bf16.mxu1 %v2074_v0 }
  0x93   : > { %1900 = vmatprep.subr.msk.bf16.mxu0 %vm259_vm2, %v463_v27  ;;  %v475_v31 = vsel %vm259_vm2, %v464_v28, 0  ;;  %v1919_v27 = vld [vmem:[%s2430_s1 + $0x1c] sm:$0xf] }
  0x95   : > { %v564_v32 = vpop.permute.xlu0 %563  ;;  %v566_v33 = vpop.permute.xlu1 %565 }
  0x96   : > { %v572_v36 = vsel %vm571_vm5, %v564_v32, %v566_v33 }
  0x97   : > { %1897 = vmatmul.mubr.msk.bf16.vlgmr.msra.gmra.mrb[4].mxu0 %vm255_vm3, %v226_v29  ;;  %1993 = vmatmul.mubr.msk.bf16.vlgmr.msra.gmra.mrb[4].mxu1 %vm255_vm3, %v226_v29  ;;  %v579_v40 = vsel %vm259_vm2, %v572_v36, 0 }
  0x98   : > { %478 = vmatpush1.bf16.msra.mxu0 %v469_v30  ;;  %1997 = vmatpush3.bf16.msra.mxu1 %v475_v31  ;;  %v1923_v30 = vld [vmem:[%s2430_s1 + $0x20] sm:$0xf] }
  0x99   : > { %v568_v34 = vpop.permute.xlu0 %567  ;;  %509 = vmatprep.mubr.bf16.mxu0 %v2075_v1  ;;  %1998 = vmatprep.mubr.msk.bf16.mxu1 %vm2076_vm0, %v2074_v0  ;;  %v570_v35 = vpop.permute.xlu1 %569 }
  0x9a   : > { %v573_v37 = vsel %vm571_vm5, %v566_v33, %v568_v34  ;;  %v574_v38 = vsel %vm571_vm5, %v568_v34, %v570_v35  ;;  %2002 = vmatprep.subr.bf16.mxu1 %v2074_v0 }
  0x9b   : > { %1904 = vmatprep.subr.msk.bf16.mxu0 %vm259_vm2, %v573_v37  ;;  %v585_v41 = vsel %vm259_vm2, %v574_v38, 0 }
  0x9d   : > { %v674_v42 = vpop.permute.xlu0 %673  ;;  %v676_v43 = vpop.permute.xlu1 %675 }
  0x9e   : > { %v682_v46 = vsel %vm681_vm6, %v674_v42, %v676_v43 }
  0x9f   : > { %1901 = vmatmul.mubr.msk.bf16.vlgmr.msra.gmra.mrb[8].mxu0 %vm255_vm3, %v1899_v39  ;;  %1999 = vmatmul.mubr.msk.bf16.vlgmr.msra.gmra.mrb[8].mxu1 %vm255_vm3, %v1899_v39  ;;  %v689_v50 = vsel %vm259_vm2, %v682_v46, 0 }
  0xa0   : > { %588 = vmatpush1.bf16.msra.mxu0 %v579_v40  ;;  %2003 = vmatpush3.bf16.msra.mxu1 %v585_v41 }
  0xa1   : > { %v678_v44 = vpop.permute.xlu0 %677  ;;  %619 = vmatprep.mubr.bf16.mxu0 %v2075_v1  ;;  %2004 = vmatprep.mubr.msk.bf16.mxu1 %vm2076_vm0, %v2074_v0  ;;  %v680_v45 = vpop.permute.xlu1 %679 }
  0xa2   : > { %v683_v47 = vsel %vm681_vm6, %v676_v43, %v678_v44  ;;  %v684_v48 = vsel %vm681_vm6, %v678_v44, %v680_v45  ;;  %2008 = vmatprep.subr.bf16.mxu1 %v2074_v0 }
  0xa3   : > { %1908 = vmatprep.subr.msk.bf16.mxu0 %vm259_vm2, %v683_v47  ;;  %v695_v51 = vsel %vm259_vm2, %v684_v48, 0 }
  0xa5   : > { %v784_v52 = vpop.permute.xlu0 %783  ;;  %v786_v53 = vpop.permute.xlu1 %785 }
  0xa6   : > { %v792_v56 = vsel %vm791_vm7, %v784_v52, %v786_v53 }
  0xa7   : > { %1905 = vmatmul.mubr.msk.bf16.vlgmr.msra.gmra.mrb[12].mxu0 %vm255_vm3, %v1903_v49  ;;  %2005 = vmatmul.mubr.msk.bf16.vlgmr.msra.gmra.mrb[12].mxu1 %vm255_vm3, %v1903_v49  ;;  %v799_v60 = vsel %vm259_vm2, %v792_v56, 0 }
  0xa8   : > { %698 = vmatpush1.bf16.msra.mxu0 %v689_v50  ;;  %2009 = vmatpush3.bf16.msra.mxu1 %v695_v51 }
  0xa9   : > { %v788_v54 = vpop.permute.xlu0 %787  ;;  %729 = vmatprep.mubr.bf16.mxu0 %v2075_v1  ;;  %2010 = vmatprep.mubr.msk.bf16.mxu1 %vm2076_vm0, %v2074_v0  ;;  %v790_v55 = vpop.permute.xlu1 %789 }
  0xaa   : > { %v793_v57 = vsel %vm791_vm7, %v786_v53, %v788_v54  ;;  %v794_v58 = vsel %vm791_vm7, %v788_v54, %v790_v55  ;;  %2014 = vmatprep.subr.bf16.mxu1 %v2074_v0 }
  0xab   : > { %1912 = vmatprep.subr.msk.bf16.mxu0 %vm259_vm2, %v793_v57  ;;  %v805_v61 = vsel %vm259_vm2, %v794_v58, 0 }
  0xad   : > { %v894_v62 = vpop.permute.xlu0 %893  ;;  %v896_v63 = vpop.permute.xlu1 %895 }
  0xae   : > { %v902_v4 = vsel %vm901_vm8, %v894_v62, %v896_v63 }
  0xaf   : > { %1909 = vmatmul.mubr.msk.bf16.vlgmr.msra.gmra.mrb[16].mxu0 %vm255_vm3, %v1907_v59  ;;  %2011 = vmatmul.mubr.msk.bf16.vlgmr.msra.gmra.mrb[16].mxu1 %vm255_vm3, %v1907_v59  ;;  %v909_v8 = vsel %vm259_vm2, %v902_v4, 0 }
  0xb0   : > { %808 = vmatpush1.bf16.msra.mxu0 %v799_v60  ;;  %2015 = vmatpush3.bf16.msra.mxu1 %v805_v61 }
  0xb1   : > { %v898_v2 = vpop.permute.xlu0 %897  ;;  %839 = vmatprep.mubr.bf16.mxu0 %v2075_v1  ;;  %2016 = vmatprep.mubr.msk.bf16.mxu1 %vm2076_vm0, %v2074_v0  ;;  %v900_v3 = vpop.permute.xlu1 %899 }
  0xb2   : > { %v903_v5 = vsel %vm901_vm8, %v896_v63, %v898_v2  ;;  %v904_v6 = vsel %vm901_vm8, %v898_v2, %v900_v3  ;;  %2020 = vmatprep.subr.bf16.mxu1 %v2074_v0 }
  0xb3   : > { %1916 = vmatprep.subr.msk.bf16.mxu0 %vm259_vm2, %v903_v5  ;;  %v915_v9 = vsel %vm259_vm2, %v904_v6, 0 }
  0xb5   : > { %v1004_v10 = vpop.permute.xlu0 %1003  ;;  %v1006_v11 = vpop.permute.xlu1 %1005 }
  0xb6   : > { %v1012_v14 = vsel %vm1011_vm9, %v1004_v10, %v1006_v11 }
  0xb7   : > { %1913 = vmatmul.mubr.msk.bf16.vlgmr.msra.gmra.mrb[20].mxu0 %vm255_vm3, %v1911_v7  ;;  %2017 = vmatmul.mubr.msk.bf16.vlgmr.msra.gmra.mrb[20].mxu1 %vm255_vm3, %v1911_v7  ;;  %v1019_v18 = vsel %vm259_vm2, %v1012_v14, 0 }
  0xb8   : > { %918 = vmatpush1.bf16.msra.mxu0 %v909_v8  ;;  %2021 = vmatpush3.bf16.msra.mxu1 %v915_v9 }
  0xb9   : > { %v1008_v12 = vpop.permute.xlu0 %1007  ;;  %949 = vmatprep.mubr.bf16.mxu0 %v2075_v1  ;;  %2022 = vmatprep.mubr.msk.bf16.mxu1 %vm2076_vm0, %v2074_v0  ;;  %v1010_v13 = vpop.permute.xlu1 %1009 }
  0xba   : > { %v1013_v15 = vsel %vm1011_vm9, %v1006_v11, %v1008_v12  ;;  %v1014_v16 = vsel %vm1011_vm9, %v1008_v12, %v1010_v13  ;;  %2026 = vmatprep.subr.bf16.mxu1 %v2074_v0 }
  0xbb   : > { %1920 = vmatprep.subr.msk.bf16.mxu0 %vm259_vm2, %v1013_v15  ;;  %v1025_v19 = vsel %vm259_vm2, %v1014_v16, 0 }
  0xbd   : > { %v1114_v20 = vpop.permute.xlu0 %1113  ;;  %v1116_v21 = vpop.permute.xlu1 %1115 }
  0xbe   : > { %v1122_v24 = vsel %vm1121_vm10, %v1114_v20, %v1116_v21 }
  0xbf   : > { %1917 = vmatmul.mubr.msk.bf16.vlgmr.msra.gmra.mrb[24].mxu0 %vm255_vm3, %v1915_v17  ;;  %2023 = vmatmul.mubr.msk.bf16.vlgmr.msra.gmra.mrb[24].mxu1 %vm255_vm3, %v1915_v17  ;;  %v1129_v28 = vsel %vm259_vm2, %v1122_v24, 0 }
  0xc0   : > { %1028 = vmatpush1.bf16.msra.mxu0 %v1019_v18  ;;  %2027 = vmatpush3.bf16.msra.mxu1 %v1025_v19 }
  0xc1   : > { %v1118_v22 = vpop.permute.xlu0 %1117  ;;  %1059 = vmatprep.mubr.bf16.mxu0 %v2075_v1  ;;  %2028 = vmatprep.mubr.msk.bf16.mxu1 %vm2076_vm0, %v2074_v0  ;;  %v1120_v23 = vpop.permute.xlu1 %1119 }
  0xc2   : > { %v1123_v25 = vsel %vm1121_vm10, %v1116_v21, %v1118_v22  ;;  %v1124_v26 = vsel %vm1121_vm10, %v1118_v22, %v1120_v23  ;;  %2032 = vmatprep.subr.bf16.mxu1 %v2074_v0 }
  0xc3   : > { %1924 = vmatprep.subr.msk.bf16.mxu0 %vm259_vm2, %v1123_v25  ;;  %v1135_v29 = vsel %vm259_vm2, %v1124_v26, 0 }
  0xc7   : > { %1921 = vmatmul.mubr.msk.bf16.vlgmr.msra.gmra.mrb[28].mxu0 %vm255_vm3, %v1919_v27  ;;  %2029 = vmatmul.mubr.msk.bf16.vlgmr.msra.gmra.mrb[28].mxu1 %vm255_vm3, %v1919_v27 }
  0xc8   : > { %1138 = vmatpush1.bf16.msra.mxu0 %v1129_v28  ;;  %2033 = vmatpush3.bf16.msra.mxu1 %v1135_v29 }
  0xc9   : > { %1169 = vmatprep.mubr.bf16.mxu0 %v2075_v1  ;;  %2034 = vmatprep.mubr.msk.bf16.mxu1 %vm2076_vm0, %v2074_v0 }
  0xcf   : > { %1925 = vmatmul.mubr.msk.bf16.vlgmr.msra.gmra.mrb[32].mxu0 %vm255_vm3, %v1923_v30  ;;  %2035 = vmatmul.mubr.msk.bf16.vlgmr.msra.gmra.mrb[32].mxu1 %vm255_vm3, %v1923_v30 }
  0xd0   : > { %1311 = vmatprep.mubr.bf16.mxu0 %v2075_v1  ;;  %1366 = vmatprep.mubr.bf16.mxu1 %v2075_v1 }
 0x162   : > { %v344_v31 = vpop.f32.mrb[0].mxu1  ;;  %v303_v32 = vpop.f32.mrb[0].mxu0 }
 0x163   : > { %v1988_v33 = vpop.f32.mrb[1].mxu1  ;;  %v305_v34 = vpop.f32.mrb[1].mxu0 }
 0x164   : > { %v347_v35 = vpop.f32.mrb[2].mxu1  ;;  %v307_v36 = vpop.f32.mrb[2].mxu0 }
 0x165   : > { %v1989_v37 = vpop.f32.mrb[3].mxu1  ;;  %v308_v0 = vpop.f32.mrb[3].mxu0 }
 0x16a   : > { %v445_v38 = vpop.f32.mrb[4].mxu1  ;;  %v404_v39 = vpop.f32.mrb[4].mxu0 }
 0x16b   : > { %v446_v40 = vadd.f32 %v445_v38, %v344_v31  ;;  %v1994_v41 = vpop.f32.mrb[5].mxu1  ;;  %v405_v42 = vadd.f32 %v404_v39, %v303_v32  ;;  %v406_v43 = vpop.f32.mrb[5].mxu0 }
 0x16c   : > { %v448_v44 = vpop.f32.mrb[6].mxu1  ;;  %v407_v45 = vadd.f32 %v406_v43, %v305_v34  ;;  %v408_v46 = vpop.f32.mrb[6].mxu0 }
 0x16d   : > { %v1995_v47 = vpop.f32.mrb[7].mxu1  ;;  %v409_v48 = vpop.f32.mrb[7].mxu0 }
 0x172   : > { %v511_v49 = vpop.f32.mrb[8].mxu0  ;;  %v552_v50 = vpop.f32.mrb[8].mxu1 }
 0x173   : > { %v558_v51 = vadd.f32 %v511_v49, %v405_v42  ;;  %v560_v52 = vadd.f32 %v552_v50, %v446_v40  ;;  %v513_v53 = vpop.f32.mrb[9].mxu0  ;;  %v2000_v54 = vpop.f32.mrb[9].mxu1 }
 0x174   : > { %v559_v55 = vadd.f32 %v513_v53, %v407_v45  ;;  %v555_v56 = vpop.f32.mrb[10].mxu1  ;;  %v515_v57 = vpop.f32.mrb[10].mxu0 }
 0x175   : > { %v2001_v58 = vpop.f32.mrb[11].mxu1  ;;  %v516_v59 = vpop.f32.mrb[11].mxu0 }
 0x17a   : > { %v621_v60 = vpop.f32.mrb[12].mxu0  ;;  %v662_v61 = vpop.f32.mrb[12].mxu1 }
 0x17b   : > { %v668_v62 = vadd.f32 %v621_v60, %v558_v51  ;;  %v670_v63 = vadd.f32 %v662_v61, %v560_v52  ;;  %v623_v2 = vpop.f32.mrb[13].mxu0  ;;  %v2006_v3 = vpop.f32.mrb[13].mxu1 }
 0x17c   : > { %v669_v4 = vadd.f32 %v623_v2, %v559_v55  ;;  %v665_v5 = vpop.f32.mrb[14].mxu1  ;;  %v625_v6 = vpop.f32.mrb[14].mxu0 }
 0x17d   : > { %v2007_v7 = vpop.f32.mrb[15].mxu1  ;;  %v626_v8 = vpop.f32.mrb[15].mxu0 }
 0x17e   : > { %v1225_v52 = vpop.permute.xlu0 %1224 }
 0x182   : > { %v731_v9 = vpop.f32.mrb[16].mxu0  ;;  %v772_v10 = vpop.f32.mrb[16].mxu1 }
 0x183   : > { %v778_v11 = vadd.f32 %v731_v9, %v668_v62  ;;  %v780_v12 = vadd.f32 %v772_v10, %v670_v63  ;;  %v733_v13 = vpop.f32.mrb[17].mxu0  ;;  %v2012_v14 = vpop.f32.mrb[17].mxu1 }
 0x184   : > { %v779_v15 = vadd.f32 %v733_v13, %v669_v4  ;;  %v775_v16 = vpop.f32.mrb[18].mxu1  ;;  %v735_v17 = vpop.f32.mrb[18].mxu0  ;;  %v1248_v13 = vld [vmem:[%s2432_s3] sm:$0xf] }
 0x185   : > { %v2013_v18 = vpop.f32.mrb[19].mxu1  ;;  %v736_v19 = vpop.f32.mrb[19].mxu0  ;;  %v1809_v14 = vld [vmem:[%s2433_s4] sm:$0xff] }
 0x18a   : > { %v841_v20 = vpop.f32.mrb[20].mxu0  ;;  %v882_v21 = vpop.f32.mrb[20].mxu1 }
 0x18b   : > { %v888_v22 = vadd.f32 %v841_v20, %v778_v11  ;;  %v890_v23 = vadd.f32 %v882_v21, %v780_v12  ;;  %v843_v24 = vpop.f32.mrb[21].mxu0  ;;  %v2018_v25 = vpop.f32.mrb[21].mxu1 }
 0x18c   : > { %v889_v26 = vadd.f32 %v843_v24, %v779_v15  ;;  %v885_v27 = vpop.f32.mrb[22].mxu1  ;;  %v845_v28 = vpop.f32.mrb[22].mxu0 }
 0x18d   : > { %v2019_v29 = vpop.f32.mrb[23].mxu1  ;;  %v846_v30 = vpop.f32.mrb[23].mxu0 }
 0x18e   : > { %v1929_v29 = vld [vmem:[%s2432_s3 + $0x4] sm:$0xf] }
 0x192   : > { %v951_v31 = vpop.f32.mrb[24].mxu0  ;;  %v992_v32 = vpop.f32.mrb[24].mxu1 }
 0x193   : > { %v998_v33 = vadd.f32 %v951_v31, %v888_v22  ;;  %v1000_v34 = vadd.f32 %v992_v32, %v890_v23  ;;  %v953_v35 = vpop.f32.mrb[25].mxu0  ;;  %v2024_v36 = vpop.f32.mrb[25].mxu1 }
 0x194   : > { %v999_v37 = vadd.f32 %v953_v35, %v889_v26  ;;  %v995_v0 = vpop.f32.mrb[26].mxu1  ;;  %v955_v38 = vpop.f32.mrb[26].mxu0 }
 0x195   : > { %v2025_v39 = vpop.f32.mrb[27].mxu1  ;;  %v956_v40 = vpop.f32.mrb[27].mxu0 }
 0x196   : > { %v1939_v39 = vld [vmem:[%s2432_s3 + $0x8] sm:$0xf]  ;;  %v1942_v40 = vld [vmem:[%s2432_s3 + $0xc] sm:$0xf] }
 0x19a   : > { %v1061_v41 = vpop.f32.mrb[28].mxu0  ;;  %v1102_v42 = vpop.f32.mrb[28].mxu1 }
 0x19b   : > { %v1108_v43 = vadd.f32 %v1061_v41, %v998_v33  ;;  %v1110_v44 = vadd.f32 %v1102_v42, %v1000_v34  ;;  %v1063_v45 = vpop.f32.mrb[29].mxu0  ;;  %v2030_v46 = vpop.f32.mrb[29].mxu1 }
 0x19c   : > { %v1109_v47 = vadd.f32 %v1063_v45, %v999_v37  ;;  %v1105_v48 = vpop.f32.mrb[30].mxu1  ;;  %v1065_v49 = vpop.f32.mrb[30].mxu0 }
 0x19d   : > { %v2031_v50 = vpop.f32.mrb[31].mxu1  ;;  %v1066_v51 = vpop.f32.mrb[31].mxu0 }
 0x19e   : > { %v1945_v51 = vld [vmem:[%s2432_s3 + $0x10] sm:$0xf] }
 0x1a2   : > { %v1171_v53 = vpop.f32.mrb[32].mxu0  ;;  %v1212_v54 = vpop.f32.mrb[32].mxu1 }
 0x1a3   : > { %v1218_v55 = vadd.f32 %v1171_v53, %v1108_v43  ;;  %v1220_v56 = vadd.f32 %v1212_v54, %v1110_v44  ;;  %v1173_v57 = vpop.f32.mrb[33].mxu0  ;;  %v2036_v58 = vpop.f32.mrb[33].mxu1 }
 0x1a4   : > { %v1219_v59 = vadd.f32 %v1173_v57, %v1109_v47  ;;  %v1215_v60 = vpop.f32.mrb[34].mxu1  ;;  %v1175_v61 = vpop.f32.mrb[34].mxu0 }
 0x1a5   : > { %v1227_v62 = vadd.f32 %v1225_v52, %v1218_v55  ;;  %v1229_v63 = vadd.f32 %v1225_v52, %v1220_v56  ;;  %v2037_v2 = vpop.f32.mrb[35].mxu1  ;;  %v1176_v3 = vpop.f32.mrb[35].mxu0  ;;  %v1951_v61 = vld [vmem:[%s2432_s3 + $0x18] sm:$0xf] }
 0x1a6   : > { %v1228_v4 = vadd.f32 %v1225_v52, %v1219_v59  ;;  %v1948_v52 = vld [vmem:[%s2432_s3 + $0x14] sm:$0xf] }
 0x1a7   : > { %v1230_v5 = vmax.f32 %v1227_v62, 0.0  ;;  %v1232_v6 = vmax.f32 %v1229_v63, 0.0  ;;  %v1954_v62 = vld [vmem:[%s2432_s3 + $0x1c] sm:$0xf] }
 0x1a8   : > { %v1231_v7 = vmax.f32 %v1228_v4, 0.0 }
 0x1a9   : > { %v1965_v8 = vpack.c.bf16 %v1232_v6, %v1232_v6  ;;  %v2065_v10 = vpack.c.bf16 %v1230_v5, %v1230_v5 }
 0x1aa   : > { %v2064_v9 = vpack.c.bf16 %v1231_v7, %v1231_v7  ;;  %v1957_v7 = vld [vmem:[%s2432_s3 + $0x20] sm:$0xf] }
 0x1ab   : > { %1247 = vst [vmem:[#allocation2 + $0x8] sm:$0xf] %v1965_v8  ;;  %v1329_v11 = vsel %vm259_vm2, %v2065_v10, 0 }
 0x1ac   : > { %1937 = vmatprep.subr.msk.bf16.mxu1 %vm259_vm2, %v2064_v9 }
 0x1ad   : > { %1335 = vmatpush1.bf16.msra.mxu1 %v1329_v11 }
 0x1b0   : > { %1938 = vmatmul.mubr.msk.bf16.vlgmr.msra.gmra.mrb[36].mxu1 %vm255_vm3, %v1248_v13 }
 0x1b1   : > { %1488 = vmatprep.mubr.bf16.mxu1 %v2075_v1 }
 0x1b2   : > { %v2063_v12 = vld [vmem:[#allocation2 + $0x8] ss:$0 sps:$4 sm:$0xff]  }
 0x1b3   : > { %1381 = vrot.lane.b32.xlu1 %v2063_v12, %s2078_s25  ;;  %1266 = vrot.lane.b32.xlu0 %v2063_v12, %s2077_s24 }
 0x1b7   : > { %1505 = vrot.lane.b32.xlu1 %v2063_v12, %s2080_s27  ;;  %1443 = vrot.lane.b32.xlu0 %v2063_v12, %s2079_s26 }
 0x1bb   : > { %1629 = vrot.lane.b32.xlu1 %v2063_v12, %s2082_s29  ;;  %1567 = vrot.lane.b32.xlu0 %v2063_v12, %s2081_s28 }
 0x1bf   : > { %1691 = vrot.lane.b32.xlu0 %v2063_v12, %s2083_s30  ;;  %1262 = vrot.lane.b32.xlu1 %v2065_v10, %s2077_s24 }
 0x1c3   : > { %1379 = vrot.lane.b32.xlu0 %v2064_v9, %s2078_s25  ;;  %1264 = vrot.lane.b32.xlu1 %v2064_v9, %s2077_s24 }
 0x1c7   : > { %1439 = vrot.lane.b32.xlu0 %v2065_v10, %s2079_s26  ;;  %1377 = vrot.lane.b32.xlu1 %v2065_v10, %s2078_s25 }
 0x1cb   : > { %1503 = vrot.lane.b32.xlu0 %v2064_v9, %s2080_s27  ;;  %1441 = vrot.lane.b32.xlu1 %v2064_v9, %s2079_s26 }
 0x1cf   : > { %1563 = vrot.lane.b32.xlu0 %v2065_v10, %s2081_s28  ;;  %1501 = vrot.lane.b32.xlu1 %v2065_v10, %s2080_s27 }
 0x1d3   : > { %1627 = vrot.lane.b32.xlu0 %v2064_v9, %s2082_s29  ;;  %1565 = vrot.lane.b32.xlu1 %v2064_v9, %s2081_s28 }
 0x1d7   : > { %1687 = vrot.lane.b32.xlu0 %v2065_v10, %s2083_s30  ;;  %1625 = vrot.lane.b32.xlu1 %v2065_v10, %s2082_s29 }
 0x1db   : > { %1751 = vrot.lane.b32.xlu0 %v2064_v9, %s2084_s6  ;;  %1689 = vrot.lane.b32.xlu1 %v2064_v9, %s2083_s30 }
 0x1df   : > { %1812 = vperm.xlu0 %2057, %v1809_v14   ;;  %1749 = vrot.lane.b32.xlu1 %v2065_v10, %s2084_s6 }
 0x1e3   : > { %1753 = vrot.lane.b32.xlu1 %v2063_v12, %s2084_s6 }
 0x225   : > { %v1382_v15 = vpop.permute.xlu1 %1381  ;;  %v1267_v16 = vpop.permute.xlu0 %1266 }
 0x229   : > { %v1506_v17 = vpop.permute.xlu1 %1505  ;;  %v1444_v18 = vpop.permute.xlu0 %1443 }
 0x22d   : > { %v1630_v19 = vpop.permute.xlu1 %1629  ;;  %v1568_v20 = vpop.permute.xlu0 %1567 }
 0x231   : > { %v1692_v21 = vpop.permute.xlu0 %1691  ;;  %v1263_v22 = vpop.permute.xlu1 %1262 }
 0x235   : > { %v1380_v23 = vpop.permute.xlu0 %1379  ;;  %v1265_v24 = vpop.permute.xlu1 %1264 }
 0x236   : > { %v1268_v25 = vsel %vm251_vm1, %v1263_v22, %v1265_v24  ;;  %v1269_v26 = vsel %vm251_vm1, %v1265_v24, %v1267_v16  ;;  %v1384_v28 = vsel %vm461_vm4, %v1380_v23, %v1382_v15 }
 0x237   : > { %v1274_v27 = vsel %vm259_vm2, %v1268_v25, 0  ;;  %1933 = vmatprep.subr.msk.bf16.mxu0 %vm259_vm2, %v1269_v26 }
 0x238   : > { %1280 = vmatpush1.bf16.msra.mxu0 %v1274_v27 }
 0x239   : > { %v1440_v30 = vpop.permute.xlu0 %1439  ;;  %1940 = vmatprep.subr.msk.bf16.mxu0 %vm259_vm2, %v1384_v28  ;;  %v1378_v31 = vpop.permute.xlu1 %1377 }
 0x23a   : > { %v1383_v32 = vsel %vm461_vm4, %v1378_v31, %v1380_v23 }
 0x23b   : > { %v1389_v33 = vsel %vm259_vm2, %v1383_v32, 0  ;;  %1934 = vmatmul.mubr.msk.bf16.vlgmr.msra.gmra.mrb[36].mxu0 %vm255_vm3, %v1929_v29 }
 0x23c   : > { %1395 = vmatpush1.bf16.msra.mxu0 %v1389_v33  ;;  %1426 = vmatprep.mubr.bf16.mxu0 %v2075_v1 }
 0x23d   : > { %v1504_v34 = vpop.permute.xlu0 %1503  ;;  %v1442_v35 = vpop.permute.xlu1 %1441 }
 0x23e   : > { %v1508_v36 = vsel %vm681_vm6, %v1504_v34, %v1506_v17  ;;  %v1445_v37 = vsel %vm571_vm5, %v1440_v30, %v1442_v35  ;;  %v1446_v0 = vsel %vm571_vm5, %v1442_v35, %v1444_v18 }
 0x23f   : > { %v1451_v38 = vsel %vm259_vm2, %v1445_v37, 0  ;;  %1943 = vmatprep.subr.msk.bf16.mxu1 %vm259_vm2, %v1446_v0  ;;  %1946 = vmatprep.subr.msk.bf16.mxu0 %vm259_vm2, %v1508_v36 }
 0x240   : > { %1457 = vmatpush1.bf16.msra.mxu1 %v1451_v38 }
 0x241   : > { %v1564_v41 = vpop.permute.xlu0 %1563  ;;  %v1502_v42 = vpop.permute.xlu1 %1501 }
 0x242   : > { %v1507_v43 = vsel %vm681_vm6, %v1502_v42, %v1504_v34 }
 0x243   : > { %v1513_v44 = vsel %vm259_vm2, %v1507_v43, 0  ;;  %1941 = vmatmul.mubr.msk.bf16.vlgmr.msra.gmra.mrb[40].mxu0 %vm255_vm3, %v1939_v39  ;;  %1944 = vmatmul.mubr.msk.bf16.vlgmr.msra.gmra.mrb[40].mxu1 %vm255_vm3, %v1942_v40 }
 0x244   : > { %1519 = vmatpush1.bf16.msra.mxu0 %v1513_v44  ;;  %1550 = vmatprep.mubr.bf16.mxu0 %v2075_v1 }
 0x245   : > { %v1628_v45 = vpop.permute.xlu0 %1627  ;;  %v1566_v46 = vpop.permute.xlu1 %1565  ;;  %1612 = vmatprep.mubr.bf16.mxu1 %v2075_v1 }
 0x246   : > { %v1632_v47 = vsel %vm901_vm8, %v1628_v45, %v1630_v19  ;;  %v1569_v48 = vsel %vm791_vm7, %v1564_v41, %v1566_v46  ;;  %v1570_v49 = vsel %vm791_vm7, %v1566_v46, %v1568_v20 }
 0x247   : > { %v1575_v50 = vsel %vm259_vm2, %v1569_v48, 0  ;;  %1949 = vmatprep.subr.msk.bf16.mxu1 %vm259_vm2, %v1570_v49  ;;  %1952 = vmatprep.subr.msk.bf16.mxu0 %vm259_vm2, %v1632_v47 }
 0x248   : > { %1581 = vmatpush1.bf16.msra.mxu1 %v1575_v50 }
 0x249   : > { %v1626_v53 = vpop.permute.xlu1 %1625  ;;  %v1688_v56 = vpop.permute.xlu0 %1687 }
 0x24a   : > { %v1631_v54 = vsel %vm901_vm8, %v1626_v53, %v1628_v45 }
 0x24b   : > { %v1637_v55 = vsel %vm259_vm2, %v1631_v54, 0  ;;  %1947 = vmatmul.mubr.msk.bf16.vlgmr.msra.gmra.mrb[44].mxu0 %vm255_vm3, %v1945_v51  ;;  %1950 = vmatmul.mubr.msk.bf16.vlgmr.msra.gmra.mrb[44].mxu1 %vm255_vm3, %v1948_v52 }
 0x24c   : > { %1643 = vmatpush1.bf16.msra.mxu0 %v1637_v55  ;;  %1674 = vmatprep.mubr.bf16.mxu0 %v2075_v1 }
 0x24d   : > { %v1690_v57 = vpop.permute.xlu1 %1689  ;;  %1736 = vmatprep.mubr.bf16.mxu1 %v2075_v1  ;;  %v1752_v2 = vpop.permute.xlu0 %1751 }
 0x24e   : > { %v1693_v58 = vsel %vm1011_vm9, %v1688_v56, %v1690_v57  ;;  %v1694_v59 = vsel %vm1011_vm9, %v1690_v57, %v1692_v21 }
 0x24f   : > { %v1699_v60 = vsel %vm259_vm2, %v1693_v58, 0  ;;  %1955 = vmatprep.subr.msk.bf16.mxu1 %vm259_vm2, %v1694_v59 }
 0x250   : > { %1705 = vmatpush1.bf16.msra.mxu1 %v1699_v60 }
 0x251   : > { %v1750_v63 = vpop.permute.xlu1 %1749 }
 0x252   : > { %v1755_v3 = vsel %vm1121_vm10, %v1750_v63, %v1752_v2 }
 0x253   : > { %1953 = vmatmul.mubr.msk.bf16.vlgmr.msra.gmra.mrb[48].mxu0 %vm255_vm3, %v1951_v61  ;;  %1956 = vmatmul.mubr.msk.bf16.vlgmr.msra.gmra.mrb[48].mxu1 %vm255_vm3, %v1954_v62  ;;  %v1761_v6 = vsel %vm259_vm2, %v1755_v3, 0 }
 0x254   : > { %1798 = vmatprep.mubr.bf16.mxu0 %v2075_v1 }
 0x255   : > { %v1754_v4 = vpop.permute.xlu1 %1753 }
 0x256   : > { %v1756_v5 = vsel %vm1121_vm10, %v1752_v2, %v1754_v4 }
 0x257   : > { %1958 = vmatprep.subr.msk.bf16.mxu0 %vm259_vm2, %v1756_v5 }
 0x258   : > { %1767 = vmatpush1.bf16.msra.mxu0 %v1761_v6 }
 0x25b   : > { %1959 = vmatmul.mubr.msk.bf16.vlgmr.msra.gmra.mrb[52].mxu0 %vm255_vm3, %v1957_v7 }
 0x25e   : > { %v1813_v55 = vpop.permute.xlu0 %1812 }
 0x283   : > { %v1368_v8 = vpop.f32.mrb[36].mxu1 }
 0x284   : > { %v1370_v9 = vpop.f32.mrb[37].mxu1 }
 0x285   : > { %v1372_v10 = vpop.f32.mrb[38].mxu1 }
 0x286   : > { %v1373_v11 = vpop.f32.mrb[39].mxu1 }
 0x30e   : > { %v1313_v12 = vpop.f32.mrb[36].mxu0 }
 0x30f   : > { %v1315_v1 = vpop.f32.mrb[37].mxu0  ;;  %v1369_v13 = vadd.f32 %v1368_v8, %v1313_v12 }
 0x310   : > { %v1317_v14 = vpop.f32.mrb[38].mxu0  ;;  %v1371_v15 = vadd.f32 %v1370_v9, %v1315_v1 }
 0x311   : > { %v1318_v16 = vpop.f32.mrb[39].mxu0 }
 0x316   : > { %v1428_v17 = vpop.f32.mrb[40].mxu0  ;;  %v1490_v18 = vpop.f32.mrb[40].mxu1 }
 0x317   : > { %v1435_v19 = vadd.f32 %v1428_v17, %v1369_v13  ;;  %v1430_v20 = vpop.f32.mrb[41].mxu0  ;;  %v1492_v21 = vpop.f32.mrb[41].mxu1 }
 0x318   : > { %v1436_v22 = vadd.f32 %v1430_v20, %v1371_v15  ;;  %v1432_v23 = vpop.f32.mrb[42].mxu0  ;;  %v1494_v24 = vpop.f32.mrb[42].mxu1 }
 0x319   : > { %v1497_v25 = vadd.f32 %v1490_v18, %v1435_v19  ;;  %v1433_v26 = vpop.f32.mrb[43].mxu0  ;;  %v1495_v27 = vpop.f32.mrb[43].mxu1 }
 0x31a   : > { %v1498_v28 = vadd.f32 %v1492_v21, %v1436_v22 }
 0x31e   : > { %v1552_v29 = vpop.f32.mrb[44].mxu0  ;;  %v1614_v30 = vpop.f32.mrb[44].mxu1 }
 0x31f   : > { %v1559_v31 = vadd.f32 %v1552_v29, %v1497_v25  ;;  %v1554_v32 = vpop.f32.mrb[45].mxu0  ;;  %v1616_v33 = vpop.f32.mrb[45].mxu1 }
 0x320   : > { %v1560_v34 = vadd.f32 %v1554_v32, %v1498_v28  ;;  %v1556_v35 = vpop.f32.mrb[46].mxu0  ;;  %v1618_v36 = vpop.f32.mrb[46].mxu1 }
 0x321   : > { %v1621_v37 = vadd.f32 %v1614_v30, %v1559_v31  ;;  %v1557_v0 = vpop.f32.mrb[47].mxu0  ;;  %v1619_v38 = vpop.f32.mrb[47].mxu1 }
 0x322   : > { %v1622_v39 = vadd.f32 %v1616_v33, %v1560_v34 }
 0x326   : > { %v1676_v40 = vpop.f32.mrb[48].mxu0  ;;  %v1738_v41 = vpop.f32.mrb[48].mxu1 }
 0x327   : > { %v1683_v42 = vadd.f32 %v1676_v40, %v1621_v37  ;;  %v1678_v43 = vpop.f32.mrb[49].mxu0  ;;  %v1740_v44 = vpop.f32.mrb[49].mxu1 }
 0x328   : > { %v1684_v45 = vadd.f32 %v1678_v43, %v1622_v39  ;;  %v1680_v46 = vpop.f32.mrb[50].mxu0  ;;  %v1742_v47 = vpop.f32.mrb[50].mxu1 }
 0x329   : > { %v1745_v48 = vadd.f32 %v1738_v41, %v1683_v42  ;;  %v1681_v49 = vpop.f32.mrb[51].mxu0  ;;  %v1743_v50 = vpop.f32.mrb[51].mxu1 }
 0x32a   : > { %v1746_v51 = vadd.f32 %v1740_v44, %v1684_v45 }
 0x32e   : > { %v1800_v52 = vpop.f32.mrb[52].mxu0 }
 0x32f   : > { %v1807_v53 = vadd.f32 %v1800_v52, %v1745_v48  ;;  %v1802_v54 = vpop.f32.mrb[53].mxu0 }
 0x330   : > { %v1808_v56 = vadd.f32 %v1802_v54, %v1746_v51  ;;  %v1804_v57 = vpop.f32.mrb[54].mxu0 }
 0x331   : > { %v1815_v58 = vadd.f32 %v1813_v55, %v1807_v53  ;;  %v1805_v59 = vpop.f32.mrb[55].mxu0 }
 0x332   : > { %v1816_v60 = vadd.f32 %v1813_v55, %v1808_v56 }
 0x333   : > { %v1817_v61 = vmax.f32 %v1815_v58, 0.0 }
 0x334   : > { %v1818_v62 = vmax.f32 %v1816_v60, 0.0 }
 0x335   : > { %1819 = vst [vmem:[%s224_s13] sm:$0xff] %v1817_v61 }
 0x336   : > { %1820 = vst [vmem:[%s224_s13 + $0x8] sm:$0xff] %v1818_v62 }
 0x337 PF: > { %s15_s18 = sadd.s32 1, %s2072_s18  }
 0x338   : > { %p12_p4 = scmp.ge.s32.totalorder %s15_s18, 4  }
 0x33a   :  { %14 = sbr.rel (!%p12_p4) target bundleno = 1 (0x1), region = 86 }

</bundles_post_ra>
